<compile_context>
chip_gen: v5e
topology: v5e:2x2
jax: 0.10.0
libtpu: 0.0.40
codegen_flags: <defaults>
</compile_context>

<pallas_src>
import functools

import jax
import jax.numpy as jnp
from jax.experimental import pallas as pl
from jax.experimental.pallas import tpu as pltpu


def _round_up(x, m):
    return (x + m - 1) // m * m


def mlp_kernel(x_ref, w1_ref, b1_ref, w2_ref, b2_ref,
               w3_ref, b3_ref, w4_ref, b4_ref, o_ref):
    # x_ref: (8, TB) features-major tile; batch lives on the lane axis.
    h = x_ref[...]
    for w_ref, b_ref in ((w1_ref, b1_ref), (w2_ref, b2_ref),
                         (w3_ref, b3_ref), (w4_ref, b4_ref)):
        h = jax.nn.sigmoid(
            jnp.dot(w_ref[...], h, preferred_element_type=jnp.float32)
            + b_ref[...])
    o_ref[...] = h.astype(o_ref.dtype)   # (1, TB): lane-dense output store


def mlp_forward(x, params, *, tb=16384):
    """x: (B, 8) float32.  params: [(W (out,in), b (out,)), ...] x4.  -> (B, 1)."""
    (w1, b1), (w2, b2), (w3, b3), (w4, b4) = params
    B, F = x.shape
    assert F == w1.shape[1]

    # Batch tile: multiple of 128 (lane axis), capped so it stays a small
    # fraction of VMEM (8 x TB f32 = 32*TB bytes; TB=16384 -> 512 KiB/block,
    # double-buffered -> 1 MiB, safe on every chip incl. v7x 64 MiB VMEM).
    tb = _round_up(min(tb, _round_up(B, 128)), 128)
    b_pad = _round_up(B, tb)
    grid = (b_pad // tb,)

    # Features-major input (8, B_pad): batch on the lane axis -> dense DMAs.
    x_t = x.T
    if b_pad != B:
        x_t = jnp.pad(x_t, ((0, 0), (0, b_pad - B)))

    # Biases as (out, 1) columns so they broadcast over the lane (batch) axis.
    biases = [b.reshape(-1, 1) for b in (b1, b2, b3, b4)]

    # Resident (never re-DMA'd) full-array blocks for weights / biases.
    resident = lambda a: pl.BlockSpec(a.shape, lambda i: (0, 0))

    out = pl.pallas_call(
        mlp_kernel,
        out_shape=jax.ShapeDtypeStruct((1, b_pad), jnp.float32),
        grid=grid,
        in_specs=[
            pl.BlockSpec((F, tb), lambda i: (0, i)),   # streamed x tiles
            resident(w1), resident(biases[0]),
            resident(w2), resident(biases[1]),
            resident(w3), resident(biases[2]),
            resident(w4), resident(biases[3]),
        ],
        out_specs=pl.BlockSpec((1, tb), lambda i: (0, i)),
        compiler_params=pltpu.CompilerParams(
            dimension_semantics=("parallel",)),
    )(x_t, w1, biases[0], w2, biases[1], w3, biases[2], w4, biases[3])

    # Back to batch-major (B, 1).  (Tiny: B*4 bytes.)
    return out[:, :B].T


def init_params(key):
    """PyTorch nn.Linear default init: U(-1/sqrt(fan_in), 1/sqrt(fan_in)).
    Weights in PyTorch (out, in) layout, biases (out,)."""
    dims = [(8, 6), (6, 4), (4, 2), (2, 1)]
    params = []
    for fan_in, fan_out in dims:
        key, kw, kb = jax.random.split(key, 3)
        bound = float(fan_in) ** -0.5
        w = jax.random.uniform(kw, (fan_out, fan_in), jnp.float32, -bound, bound)
        b = jax.random.uniform(kb, (fan_out,), jnp.float32, -bound, bound)
        params.append((w, b))
    return params


def reference_forward(x, params):
    h = x
    for w, b in params:
        h = jax.nn.sigmoid(h @ w.T + b)
    return h


if __name__ == "__main__":
    key = jax.random.PRNGKey(0)
    key, kx = jax.random.split(key)
    params = init_params(key)

    fwd = jax.jit(functools.partial(mlp_forward), static_argnames=("tb",))

    # Primary check: small batch, single grid step.
    B = 8
    x = jax.random.normal(kx, (B, 8), jnp.float32)
    out = jax.block_until_ready(fwd(x, params))
    ref = reference_forward(x, params)
    assert out.shape == (B, 1)
    assert jnp.allclose(out, ref, atol=1e-5, rtol=1e-5), "mismatch vs reference (B=8)"

    # Second check: non-multiple-of-tile batch -> exercises padding, a
    # multi-step grid, and resident-weight index_maps.
    B2 = 300
    x2 = jax.random.normal(jax.random.PRNGKey(1), (B2, 8), jnp.float32)
    out2 = jax.block_until_ready(fwd(x2, params, tb=128))
    ref2 = reference_forward(x2, params)
    assert out2.shape == (B2, 1)
    assert jnp.allclose(out2, ref2, atol=1e-5, rtol=1e-5), "mismatch vs reference (B=300)"

    print("KERNEL_OK")
</pallas_src>

<mosaic_0001>
module attributes {stable_mosaic.version = 11 : i64} {
  func.func @mlp_kernel(%arg0: i32, %arg1: memref<8x128xf32, #tpu.memory_space<vmem>>, %arg2: memref<6x8xf32, #tpu.memory_space<vmem>>, %arg3: memref<6x1xf32, #tpu.memory_space<vmem>>, %arg4: memref<4x6xf32, #tpu.memory_space<vmem>>, %arg5: memref<4x1xf32, #tpu.memory_space<vmem>>, %arg6: memref<2x4xf32, #tpu.memory_space<vmem>>, %arg7: memref<2x1xf32, #tpu.memory_space<vmem>>, %arg8: memref<1x2xf32, #tpu.memory_space<vmem>>, %arg9: memref<1x1xf32, #tpu.memory_space<vmem>>, %arg10: memref<1x128xf32, #tpu.memory_space<vmem>>) attributes {dimension_semantics = [#tpu.dimension_semantics<parallel>], iteration_bounds = array<i64: 1>, scalar_prefetch = 0 : i64, scratch_operands = 0 : i64, tpu.core_type = #tpu.core_type<tc>, window_params = [{transform_indices = @transform_0, window_bounds = array<i64: 8, 128>}, {pipeline_mode = #tpu.pipeline_mode<synchronous>, transform_indices = @transform_1, window_bounds = array<i64: 6, 8>}, {pipeline_mode = #tpu.pipeline_mode<synchronous>, transform_indices = @transform_2, window_bounds = array<i64: 6, 1>}, {pipeline_mode = #tpu.pipeline_mode<synchronous>, transform_indices = @transform_3, window_bounds = array<i64: 4, 6>}, {pipeline_mode = #tpu.pipeline_mode<synchronous>, transform_indices = @transform_4, window_bounds = array<i64: 4, 1>}, {pipeline_mode = #tpu.pipeline_mode<synchronous>, transform_indices = @transform_5, window_bounds = array<i64: 2, 4>}, {pipeline_mode = #tpu.pipeline_mode<synchronous>, transform_indices = @transform_6, window_bounds = array<i64: 2, 1>}, {pipeline_mode = #tpu.pipeline_mode<synchronous>, transform_indices = @transform_7, window_bounds = array<i64: 1, 2>}, {pipeline_mode = #tpu.pipeline_mode<synchronous>, transform_indices = @transform_8, window_bounds = array<i64: 1, 1>}, {transform_indices = @transform_9, window_bounds = array<i64: 1, 128>}]} {
    %c0 = arith.constant 0 : index
    %c0_0 = arith.constant 0 : index
    %0 = vector.load %arg1[%c0, %c0_0] : memref<8x128xf32, #tpu.memory_space<vmem>>, vector<8x128xf32>
    %c0_1 = arith.constant 0 : index
    %c0_2 = arith.constant 0 : index
    %1 = vector.load %arg2[%c0_1, %c0_2] : memref<6x8xf32, #tpu.memory_space<vmem>>, vector<6x8xf32>
    %cst = arith.constant dense<0.000000e+00> : vector<6x128xf32>
    %2 = tpu.matmul %1, %0, %cst {dimension_numbers = #tpu.dot_dimension_numbers<[1], [0], [0], [1], [0, 0, 1, 1], [], []>} : vector<6x8xf32>, vector<8x128xf32>, vector<6x128xf32> -> vector<6x128xf32>
    %c0_3 = arith.constant 0 : index
    %c0_4 = arith.constant 0 : index
    %3 = vector.load %arg3[%c0_3, %c0_4] : memref<6x1xf32, #tpu.memory_space<vmem>>, vector<6x1xf32>
    %4 = vector.broadcast %3 : vector<6x1xf32> to vector<6x128xf32>
    %5 = arith.addf %2, %4 : vector<6x128xf32>
    %6 = arith.negf %5 : vector<6x128xf32>
    %7 = math.exp %6 : vector<6x128xf32>
    %cst_5 = arith.constant 1.000000e+00 : f32
    %8 = vector.broadcast %cst_5 : f32 to vector<6x128xf32>
    %9 = arith.addf %8, %7 : vector<6x128xf32>
    %10 = arith.divf %8, %9 : vector<6x128xf32>
    %c0_6 = arith.constant 0 : index
    %c0_7 = arith.constant 0 : index
    %11 = vector.load %arg4[%c0_6, %c0_7] : memref<4x6xf32, #tpu.memory_space<vmem>>, vector<4x6xf32>
    %cst_8 = arith.constant dense<0.000000e+00> : vector<4x128xf32>
    %12 = tpu.matmul %11, %10, %cst_8 {dimension_numbers = #tpu.dot_dimension_numbers<[1], [0], [0], [1], [0, 0, 1, 1], [], []>} : vector<4x6xf32>, vector<6x128xf32>, vector<4x128xf32> -> vector<4x128xf32>
    %c0_9 = arith.constant 0 : index
    %c0_10 = arith.constant 0 : index
    %13 = vector.load %arg5[%c0_9, %c0_10] : memref<4x1xf32, #tpu.memory_space<vmem>>, vector<4x1xf32>
    %14 = vector.broadcast %13 : vector<4x1xf32> to vector<4x128xf32>
    %15 = arith.addf %12, %14 : vector<4x128xf32>
    %16 = arith.negf %15 : vector<4x128xf32>
    %17 = math.exp %16 : vector<4x128xf32>
    %cst_11 = arith.constant 1.000000e+00 : f32
    %18 = vector.broadcast %cst_11 : f32 to vector<4x128xf32>
    %19 = arith.addf %18, %17 : vector<4x128xf32>
    %20 = arith.divf %18, %19 : vector<4x128xf32>
    %c0_12 = arith.constant 0 : index
    %c0_13 = arith.constant 0 : index
    %21 = vector.load %arg6[%c0_12, %c0_13] : memref<2x4xf32, #tpu.memory_space<vmem>>, vector<2x4xf32>
    %cst_14 = arith.constant dense<0.000000e+00> : vector<2x128xf32>
    %22 = tpu.matmul %21, %20, %cst_14 {dimension_numbers = #tpu.dot_dimension_numbers<[1], [0], [0], [1], [0, 0, 1, 1], [], []>} : vector<2x4xf32>, vector<4x128xf32>, vector<2x128xf32> -> vector<2x128xf32>
    %c0_15 = arith.constant 0 : index
    %c0_16 = arith.constant 0 : index
    %23 = vector.load %arg7[%c0_15, %c0_16] : memref<2x1xf32, #tpu.memory_space<vmem>>, vector<2x1xf32>
    %24 = vector.broadcast %23 : vector<2x1xf32> to vector<2x128xf32>
    %25 = arith.addf %22, %24 : vector<2x128xf32>
    %26 = arith.negf %25 : vector<2x128xf32>
    %27 = math.exp %26 : vector<2x128xf32>
    %cst_17 = arith.constant 1.000000e+00 : f32
    %28 = vector.broadcast %cst_17 : f32 to vector<2x128xf32>
    %29 = arith.addf %28, %27 : vector<2x128xf32>
    %30 = arith.divf %28, %29 : vector<2x128xf32>
    %c0_18 = arith.constant 0 : index
    %c0_19 = arith.constant 0 : index
    %31 = vector.load %arg8[%c0_18, %c0_19] : memref<1x2xf32, #tpu.memory_space<vmem>>, vector<1x2xf32>
    %cst_20 = arith.constant dense<0.000000e+00> : vector<1x128xf32>
    %32 = tpu.matmul %31, %30, %cst_20 {dimension_numbers = #tpu.dot_dimension_numbers<[1], [0], [0], [1], [0, 0, 1, 1], [], []>} : vector<1x2xf32>, vector<2x128xf32>, vector<1x128xf32> -> vector<1x128xf32>
    %c0_21 = arith.constant 0 : index
    %c0_22 = arith.constant 0 : index
    %33 = vector.load %arg9[%c0_21, %c0_22] : memref<1x1xf32, #tpu.memory_space<vmem>>, vector<1x1xf32>
    %34 = vector.broadcast %33 : vector<1x1xf32> to vector<1x128xf32>
    %35 = arith.addf %32, %34 : vector<1x128xf32>
    %36 = arith.negf %35 : vector<1x128xf32>
    %37 = math.exp %36 : vector<1x128xf32>
    %cst_23 = arith.constant 1.000000e+00 : f32
    %38 = vector.broadcast %cst_23 : f32 to vector<1x128xf32>
    %39 = arith.addf %38, %37 : vector<1x128xf32>
    %40 = arith.divf %38, %39 : vector<1x128xf32>
    %c0_24 = arith.constant 0 : index
    %c0_25 = arith.constant 0 : index
    %41 = vector.load %arg10[%c0_24, %c0_25] : memref<1x128xf32, #tpu.memory_space<vmem>>, vector<1x128xf32>
    tpu.vector_store %arg10[%c0_24, %c0_25], %40 {strides = array<i32>} : memref<1x128xf32, #tpu.memory_space<vmem>>, vector<1x128xf32>,
    return
  }
  func.func @transform_0(%arg0: i32) -> (i32, i32) {
    %c0_i32 = arith.constant 0 : i32
    %c0_i32_0 = arith.constant 0 : i32
    return %c0_i32, %arg0 : i32, i32
  }
  func.func @transform_1(%arg0: i32) -> (i32, i32) {
    %c0_i32 = arith.constant 0 : i32
    %c0_i32_0 = arith.constant 0 : i32
    %c0_i32_1 = arith.constant 0 : i32
    return %c0_i32, %c0_i32_0 : i32, i32
  }
  func.func @transform_2(%arg0: i32) -> (i32, i32) {
    %c0_i32 = arith.constant 0 : i32
    %c0_i32_0 = arith.constant 0 : i32
    %c0_i32_1 = arith.constant 0 : i32
    return %c0_i32, %c0_i32_0 : i32, i32
  }
  func.func @transform_3(%arg0: i32) -> (i32, i32) {
    %c0_i32 = arith.constant 0 : i32
    %c0_i32_0 = arith.constant 0 : i32
    %c0_i32_1 = arith.constant 0 : i32
    return %c0_i32, %c0_i32_0 : i32, i32
  }
  func.func @transform_4(%arg0: i32) -> (i32, i32) {
    %c0_i32 = arith.constant 0 : i32
    %c0_i32_0 = arith.constant 0 : i32
    %c0_i32_1 = arith.constant 0 : i32
    return %c0_i32, %c0_i32_0 : i32, i32
  }
  func.func @transform_5(%arg0: i32) -> (i32, i32) {
    %c0_i32 = arith.constant 0 : i32
    %c0_i32_0 = arith.constant 0 : i32
    %c0_i32_1 = arith.constant 0 : i32
    return %c0_i32, %c0_i32_0 : i32, i32
  }
  func.func @transform_6(%arg0: i32) -> (i32, i32) {
    %c0_i32 = arith.constant 0 : i32
    %c0_i32_0 = arith.constant 0 : i32
    %c0_i32_1 = arith.constant 0 : i32
    return %c0_i32, %c0_i32_0 : i32, i32
  }
  func.func @transform_7(%arg0: i32) -> (i32, i32) {
    %c0_i32 = arith.constant 0 : i32
    %c0_i32_0 = arith.constant 0 : i32
    %c0_i32_1 = arith.constant 0 : i32
    return %c0_i32, %c0_i32_0 : i32, i32
  }
  func.func @transform_8(%arg0: i32) -> (i32, i32) {
    %c0_i32 = arith.constant 0 : i32
    %c0_i32_0 = arith.constant 0 : i32
    %c0_i32_1 = arith.constant 0 : i32
    return %c0_i32, %c0_i32_0 : i32, i32
  }
  func.func @transform_9(%arg0: i32) -> (i32, i32) {
    %c0_i32 = arith.constant 0 : i32
    %c0_i32_0 = arith.constant 0 : i32
    return %c0_i32, %arg0 : i32, i32
  }
}

</mosaic_0001>

<bundles_post_ra>
// kernel: mlp_forward.1
= control target key start
LH: loop header
LB: loop body
LE: loop exit
PB: predicated region body
PF: predicated region fallthrough
CT: control target
= control target key end

     0   :  { %vm42_vm0 = vcmask 64512   ;;  %v283_v2 = vmov 0   ;;  %vm96_vm4 = vcmask 1045504   ;;  %vm92_vm6 = vcmask 48128   ;;  %s364_s0 = inlined_call_operand.vmem [shape: f32[8,128], index: 0, kind: input, shape index: {}]   ;;  %s365_s1 = inlined_call_operand.vmem [shape: f32[6,8], index: 1, kind: input, shape index: {}]   ;;  %s366_s2 = inlined_call_operand.vmem [shape: f32[6,1], index: 2, kind: input, shape index: {}]   ;;  %s367_s4 = inlined_call_operand.vmem [shape: f32[4,1], index: 4, kind: input, shape index: {}]   ;;  %s368_s3 = inlined_call_operand.vmem [shape: f32[4,6], index: 3, kind: input, shape index: {}]   ;;  %s369_s6 = inlined_call_operand.vmem [shape: f32[2,1], index: 6, kind: input, shape index: {}]   ;;  %s370_s8 = inlined_call_operand.<no memory space> [shape: f32[1,1], index: 8, kind: input, shape index: {}]   ;;  %s371_s5 = inlined_call_operand.vmem [shape: f32[2,4], index: 5, kind: input, shape index: {}]   ;;  %s372_s7 = inlined_call_operand.vmem [shape: f32[1,2], index: 7, kind: input, shape index: {}]   ;;  %s373_s9 = inlined_call_operand.vmem [shape: f32[1,128], index: 9, kind: output, shape index: {}]  }
   0x1   :  { %v34_v0 = vld [vmem:[%s364_s0] sm:$0xff]  ;;  %265 = vset.pattern.permute.xlu0 %v283_v2  ;;  %266 = vset.pattern.permute.xlu1 %v283_v2  ;;  %v14_v25 = vstv %s370_s8  ;;  %vm150_vm10 = vcmask 1043456   ;;  %vm146_vm12 = vcmask 31744  }
   0x2   :  { %v35_v1 = vld [vmem:[%s365_s1] sm:$0x3f]  ;;  %61 = vmatpush.msra.mxu0 %v34_v0  ;;  %15 = vst [vmem:[#allocation2] sm:$0x1] %v14_v25 }
   0x3   :  { %v36_v3 = vld [vmem:[%s366_s2] sm:$0x3f]  ;;  %253 = vmatmul.msk.f32.vlgmr.msra.gmra.mxu0 %vm42_vm0, %v35_v1  ;;  %vm205_vm0 = vcmask 1041408  }
   0x4   :  { %39 = vperm.xlu0 %265, %v36_v3   ;;  %v86_v4 = vld [vmem:[%s367_s4] sm:$0xf] }
   0x5   :  { %v85_v20 = vld [vmem:[%s368_s3] sm:$0xf] }
   0x6   :  { %v140_v24 = vld [vmem:[%s369_s6] sm:$0x3] }
   0x7   :  { %143 = vperm.xlu1 %266, %v140_v24   ;;  %v139_v40 = vld [vmem:[%s371_s5] sm:$0x3] }
   0x8   :  { %v193_v57 = vld [vmem:[%s372_s7] sm:$0x1] }
   0x9   :  { %v194_v28 = vld [vmem:[#allocation2] sm:$0x1] }
   0xc   :  { %89 = vperm.xlu0 %265, %v86_v4  }
   0xf   :  { %197 = vperm.xlu1 %266, %v194_v28  }
  0x76   :  { %v40_v5 = vpop.permute.xlu0 %39 }
  0x79   :  { %v144_v42 = vpop.permute.xlu1 %143 }
  0x7e   :  { %v90_v22 = vpop.permute.xlu0 %89 }
  0x80   :  { %v63_v6 = vpop.f32.mrf.mxu0 }
  0x81   :  { %v64_v7 = vadd.f32 %v63_v6, %v40_v5  ;;  %v198_v59 = vpop.permute.xlu1 %197 }
  0x82   :  { %v200_v60 = vperm.slane %v198_v59, 0 }
  0x83   :  { %v254_v8 = vmul.f32 -1.442695, %v64_v7 }
  0x85   :  { %267 = vpow2.f32 %v254_v8 }
  0x8b   :  { %v268_v9 = vpop.eup %267 }
  0x8c   :  { %v69_v10 = vadd.f32 1.0, %v268_v9 }
  0x8e   :  { %269 = vrcp.f32 %v69_v10  ;;  %v81_v14 = vand.u32 2147483648, %v69_v10  ;;  %v79_v16 = vand.u32 2147483647, %v69_v10  ;;  %vm75_vm2 = vweird.f32 %v69_v10 }
  0x90   :  { %v82_v18 = vor.u32 1.1754944e-38, %v81_v14  ;;  %vm80_vm5 = vcmp.eq.f32.partialorder %v79_v16, 8.507059e+37 }
  0x94   :  { %v270_v11 = vpop.eup %269 }
  0x95   :  { %v71_v12 = vmul.f32 %v270_v11, %v69_v10  ;;  %vm76_vm1 = vweird.f32 %v270_v11 }
  0x96   :  { %vm77_vm3 = vmor %vm75_vm2, %vm76_vm1  ;;  %vm201_vm2 = vcmask 15360  }
  0x97   :  { %v72_v13 = vsub.f32 1.0, %v71_v12 }
  0x99   :  { %v73_v15 = vmul.f32 %v270_v11, %v72_v13 }
  0x9b   :  { %v74_v17 = vadd.f32 %v270_v11, %v73_v15 }
  0x9d   :  { %v78_v19 = vsel %vm77_vm3, %v270_v11, %v74_v17 }
  0x9e   :  { %v83_v21 = vsel %vm80_vm5, %v82_v18, %v78_v19 }
  0x9f   :  { %255 = vmatpush.msk.msra.mxu1 %vm96_vm4, %v83_v21 }
  0xa0   :  { %256 = vmatmul.msk.f32.vlgmr.msra.gmra.mxu1 %vm92_vm6, %v85_v20 }
 0x11d   :  { %v117_v23 = vpop.f32.mrf.mxu1 }
 0x11e   :  { %v118_v26 = vadd.f32 %v117_v23, %v90_v22 }
 0x120   :  { %v257_v27 = vmul.f32 -1.442695, %v118_v26 }
 0x122   :  { %271 = vpow2.f32 %v257_v27 }
 0x128   :  { %v272_v29 = vpop.eup %271 }
 0x129   :  { %v123_v30 = vadd.f32 1.0, %v272_v29 }
 0x12b   :  { %273 = vrcp.f32 %v123_v30  ;;  %v135_v34 = vand.u32 2147483648, %v123_v30  ;;  %v133_v36 = vand.u32 2147483647, %v123_v30  ;;  %vm129_vm8 = vweird.f32 %v123_v30 }
 0x12d   :  { %v136_v38 = vor.u32 1.1754944e-38, %v135_v34  ;;  %vm134_vm11 = vcmp.eq.f32.partialorder %v133_v36, 8.507059e+37 }
 0x131   :  { %v274_v31 = vpop.eup %273 }
 0x132   :  { %v125_v32 = vmul.f32 %v274_v31, %v123_v30  ;;  %vm130_vm7 = vweird.f32 %v274_v31 }
 0x133   :  { %vm131_vm9 = vmor %vm129_vm8, %vm130_vm7 }
 0x134   :  { %v126_v33 = vsub.f32 1.0, %v125_v32 }
 0x136   :  { %v127_v35 = vmul.f32 %v274_v31, %v126_v33 }
 0x138   :  { %v128_v37 = vadd.f32 %v274_v31, %v127_v35 }
 0x13a   :  { %v132_v39 = vsel %vm131_vm9, %v274_v31, %v128_v37 }
 0x13b   :  { %v137_v41 = vsel %vm134_vm11, %v136_v38, %v132_v39 }
 0x13c   :  { %258 = vmatpush.msk.msra.mxu2 %vm150_vm10, %v137_v41 }
 0x13d   :  { %259 = vmatmul.msk.f32.vlgmr.msra.gmra.mxu2 %vm146_vm12, %v139_v40 }
 0x1c0   :  { %v171_v43 = vpop.f32.mrf.mxu2 }
 0x1c1   :  { %v172_v44 = vadd.f32 %v171_v43, %v144_v42 }
 0x1c3   :  { %v260_v45 = vmul.f32 -1.442695, %v172_v44 }
 0x1c5   :  { %275 = vpow2.f32 %v260_v45 }
 0x1cb   :  { %v276_v46 = vpop.eup %275 }
 0x1cc   :  { %v177_v47 = vadd.f32 1.0, %v276_v46 }
 0x1ce   :  { %277 = vrcp.f32 %v177_v47  ;;  %v189_v51 = vand.u32 2147483648, %v177_v47  ;;  %v187_v53 = vand.u32 2147483647, %v177_v47  ;;  %vm183_vm14 = vweird.f32 %v177_v47 }
 0x1d0   :  { %v190_v55 = vor.u32 1.1754944e-38, %v189_v51  ;;  %vm188_vm1 = vcmp.eq.f32.partialorder %v187_v53, 8.507059e+37 }
 0x1d4   :  { %v278_v48 = vpop.eup %277 }
 0x1d5   :  { %v179_v49 = vmul.f32 %v278_v48, %v177_v47  ;;  %vm184_vm13 = vweird.f32 %v278_v48 }
 0x1d6   :  { %vm185_vm15 = vmor %vm183_vm14, %vm184_vm13 }
 0x1d7   :  { %v180_v50 = vsub.f32 1.0, %v179_v49 }
 0x1d9   :  { %v181_v52 = vmul.f32 %v278_v48, %v180_v50 }
 0x1db   :  { %v182_v54 = vadd.f32 %v278_v48, %v181_v52 }
 0x1dd   :  { %v186_v56 = vsel %vm185_vm15, %v278_v48, %v182_v54 }
 0x1de   :  { %v191_v58 = vsel %vm188_vm1, %v190_v55, %v186_v56 }
 0x1df   :  { %261 = vmatpush.msk.msra.mxu3 %vm205_vm0, %v191_v58 }
 0x1e0   :  { %262 = vmatmul.msk.f32.vlgmr.msra.gmra.mxu3 %vm201_vm2, %v193_v57 }
 0x263   :  { %v226_v61 = vpop.f32.mrf.mxu3 }
 0x264   :  { %v227_v62 = vadd.f32 %v226_v61, %v200_v60 }
 0x266   :  { %v263_v63 = vmul.f32 -1.442695, %v227_v62 }
 0x268   :  { %279 = vpow2.f32 %v263_v63 }
 0x26e   :  { %v280_v0 = vpop.eup %279 }
 0x26f   :  { %v232_v1 = vadd.f32 1.0, %v280_v0 }
 0x271   :  { %281 = vrcp.f32 %v232_v1  ;;  %v244_v5 = vand.u32 2147483648, %v232_v1  ;;  %v242_v7 = vand.u32 2147483647, %v232_v1  ;;  %vm238_vm4 = vweird.f32 %v232_v1 }
 0x273   :  { %v245_v9 = vor.u32 1.1754944e-38, %v244_v5  ;;  %vm243_vm6 = vcmp.eq.f32.partialorder %v242_v7, 8.507059e+37 }
 0x277   :  { %v282_v2 = vpop.eup %281 }
 0x278   :  { %v234_v3 = vmul.f32 %v282_v2, %v232_v1  ;;  %vm239_vm3 = vweird.f32 %v282_v2 }
 0x279   :  { %vm240_vm5 = vmor %vm238_vm4, %vm239_vm3 }
 0x27a   :  { %v235_v4 = vsub.f32 1.0, %v234_v3 }
 0x27c   :  { %v236_v6 = vmul.f32 %v282_v2, %v235_v4 }
 0x27e   :  { %v237_v8 = vadd.f32 %v282_v2, %v236_v6 }
 0x280   :  { %v241_v10 = vsel %vm240_vm5, %v282_v2, %v237_v8 }
 0x281   :  { %v246_v11 = vsel %vm243_vm6, %v245_v9, %v241_v10 }
 0x282   :  { %248 = vst [vmem:[%s373_s9] sm:$0x1] %v246_v11 }

</bundles_post_ra>
